<compile_context>
chip_gen: v5e
topology: v5e:2x2
jax: 0.10.0
libtpu: 0.0.40
codegen_flags: <defaults>
</compile_context>

<pallas_src>
import jax
import jax.numpy as jnp
from jax.experimental import pallas as pl
from jax.experimental.pallas import tpu as pltpu


# ----------------------------- Pallas kernel --------------------------------
def _decoder_kernel(
    x_ref, h_ref,                       # activations: x = (emb|ctx) [B,E+H], h [B,H]
    wi_ref, wh_ref, bi_ref, bh_ref,     # GRU: W_ih^T [E+H,3H], W_hh^T [H,3H], b_ih [1,3H], b_hh [1,3H]
    wfx_ref, wfh_ref, bf_ref,           # fc_out: x-part [E+H,O], h-part [H,O], bias [1,O]
    pred_ref, hnew_ref,                 # outputs: [B,O], [B,H]
):
    f32 = jnp.float32
    x = x_ref[...]                      # [B, E+H]
    h = h_ref[...]                      # [B, H]
    H = h_ref.shape[1]

    # Fused gate pre-activations (PyTorch GRU, gate order r, z, n):
    #   gi = x @ W_ih^T + b_ih        gh = h @ W_hh^T + b_hh
    gi = jnp.dot(x, wi_ref[...], preferred_element_type=f32) + bi_ref[...]   # [B, 3H]
    gh = jnp.dot(h, wh_ref[...], preferred_element_type=f32) + bh_ref[...]   # [B, 3H]

    # r, z from one fused sigmoid over the first 2H lanes.
    rz = jax.nn.sigmoid(gi[:, : 2 * H] + gh[:, : 2 * H])
    r = rz[:, :H]
    z = rz[:, H:]
    # n = tanh(gi_n + r * gh_n)   (b_in inside gi, b_hn inside gh — PyTorch semantics)
    n = jnp.tanh(gi[:, 2 * H:] + r * gh[:, 2 * H:])

    h_new = (1.0 - z) * n + z * h
    hnew_ref[...] = h_new

    # prediction = fc_out(concat(embedded, h_new, context))
    #            = x @ W_fx + h_new @ W_fh + b_f
    pred_ref[...] = (
        jnp.dot(x, wfx_ref[...], preferred_element_type=f32)
        + jnp.dot(h_new, wfh_ref[...], preferred_element_type=f32)
        + bf_ref[...]
    )


# ------------------------------ parameter prep -------------------------------
def init_params(key, output_dim, emb_dim, hid_dim):
    """Deterministic parameter init mirroring the PyTorch module's layout."""
    ks = jax.random.split(key, 7)
    scale = 0.1
    return {
        "embedding": scale * jax.random.normal(ks[0], (output_dim, emb_dim), jnp.float32),
        # nn.GRU(emb+hid, hid): PyTorch layout, gate order (r, z, n)
        "W_ih": scale * jax.random.normal(ks[1], (3 * hid_dim, emb_dim + hid_dim), jnp.float32),
        "W_hh": scale * jax.random.normal(ks[2], (3 * hid_dim, hid_dim), jnp.float32),
        "b_ih": scale * jax.random.normal(ks[3], (3 * hid_dim,), jnp.float32),
        "b_hh": scale * jax.random.normal(ks[4], (3 * hid_dim,), jnp.float32),
        # nn.Linear(emb + 2*hid, output_dim)
        "W_fc": scale * jax.random.normal(ks[5], (output_dim, emb_dim + 2 * hid_dim), jnp.float32),
        "b_fc": scale * jax.random.normal(ks[6], (output_dim,), jnp.float32),
    }


def prepare_kernel_params(params, emb_dim, hid_dim):
    """Run ONCE: transpose / fuse PyTorch-layout weights into kernel layout.

    In an autoregressive decode loop this keeps the per-step cost at just the
    fused kernel (no per-call transposes / slices)."""
    E, H = emb_dim, hid_dim
    W_ih, W_hh = params["W_ih"], params["W_hh"]     # [3H, E+H], [3H, H]
    W_fc, b_fc = params["W_fc"], params["b_fc"]     # [O, E+2H], [O]
    return {
        "embedding": params["embedding"],           # [O, E]
        "W_i": W_ih.T,                              # [E+H, 3H]
        "W_h": W_hh.T,                              # [H, 3H]
        "b_i": params["b_ih"].reshape(1, 3 * H),    # [1, 3H]
        "b_h": params["b_hh"].reshape(1, 3 * H),    # [1, 3H]
        # fc input is concat(emb, h_new, ctx); x = (emb|ctx) -> fuse emb+ctx columns
        "W_fx": jnp.concatenate([W_fc[:, :E], W_fc[:, E + H:]], axis=1).T,  # [E+H, O]
        "W_fh": W_fc[:, E:E + H].T,                 # [H, O]
        "b_f": b_fc.reshape(1, -1),                 # [1, O]
    }


# ------------------------------ forward --------------------------------------
def decoder_forward(kparams, input_ids, hidden, context):
    """Matches Decoder.forward: (input [B], hidden [1,B,H], context [1,B,H])
       -> (prediction [B, O], hidden [1,B,H])."""
    B = input_ids.shape[0]
    H = kparams["W_h"].shape[0]
    O = kparams["b_f"].shape[1]

    # glue: embedding gather (dropout = identity, eval mode) + single concat
    embedded = kparams["embedding"][input_ids]              # [B, E]
    ctx = context[0]                                        # [B, H]
    h0 = hidden[0]                                          # [B, H]
    x = jnp.concatenate([embedded, ctx], axis=1)            # [B, E+H]

    args = (x, h0,
            kparams["W_i"], kparams["W_h"], kparams["b_i"], kparams["b_h"],
            kparams["W_fx"], kparams["W_fh"], kparams["b_f"])

    vmem = pltpu.MemorySpace.VMEM
    pred, h_new = pl.pallas_call(
        _decoder_kernel,
        out_shape=(
            jax.ShapeDtypeStruct((B, O), jnp.float32),
            jax.ShapeDtypeStruct((B, H), jnp.float32),
        ),
        in_specs=[pl.BlockSpec(memory_space=vmem) for _ in args],
        out_specs=(pl.BlockSpec(memory_space=vmem),
                   pl.BlockSpec(memory_space=vmem)),
    )(*args)

    return pred, h_new[None, :, :]   # hidden back to [1, B, H]


# ------------------------------ reference (pure JAX) --------------------------
def decoder_reference(params, input_ids, hidden, context, *, emb_dim, hid_dim):
    E, H = emb_dim, hid_dim
    emb = params["embedding"][input_ids]            # [B, E]
    ctx = context[0]
    h = hidden[0]
    x = jnp.concatenate([emb, ctx], axis=1)         # [B, E+H]
    gi = x @ params["W_ih"].T + params["b_ih"]
    gh = h @ params["W_hh"].T + params["b_hh"]
    r = jax.nn.sigmoid(gi[:, :H] + gh[:, :H])
    z = jax.nn.sigmoid(gi[:, H:2 * H] + gh[:, H:2 * H])
    n = jnp.tanh(gi[:, 2 * H:] + r * gh[:, 2 * H:])
    h_new = (1.0 - z) * n + z * h
    fc_in = jnp.concatenate([emb, h_new, ctx], axis=1)
    pred = fc_in @ params["W_fc"].T + params["b_fc"]
    return pred, h_new[None]


# ------------------------------ main ------------------------------------------
if __name__ == "__main__":
    output_dim, emb_dim, hid_dim, dropout = 64, 16, 32, 0.1
    B = 8

    key = jax.random.PRNGKey(0)
    k_params, k_in, k_h, k_c = jax.random.split(key, 4)

    params = init_params(k_params, output_dim, emb_dim, hid_dim)
    kparams = prepare_kernel_params(params, emb_dim, hid_dim)   # one-time layout prep

    input_ids = jax.random.randint(k_in, (B,), 0, output_dim, dtype=jnp.int32)   # [B]
    hidden = 0.1 * jax.random.normal(k_h, (1, B, hid_dim), jnp.float32)          # [1, B, H]
    context = 0.1 * jax.random.normal(k_c, (1, B, hid_dim), jnp.float32)         # [1, B, H]

    fwd = jax.jit(decoder_forward)
    prediction, new_hidden = fwd(kparams, input_ids, hidden, context)
    jax.block_until_ready((prediction, new_hidden))

    # correctness check vs. pure-JAX reference of the PyTorch semantics
    ref_pred, ref_hidden = decoder_reference(
        params, input_ids, hidden, context, emb_dim=emb_dim, hid_dim=hid_dim)
    assert prediction.shape == (B, output_dim)
    assert new_hidden.shape == (1, B, hid_dim)
    assert jnp.allclose(prediction, ref_pred, atol=1e-4, rtol=1e-4)
    assert jnp.allclose(new_hidden, ref_hidden, atol=1e-4, rtol=1e-4)

    print("KERNEL_OK")
</pallas_src>

<mosaic_0001>
module attributes {stable_mosaic.version = 11 : i64} {
  func.func @_decoder_kernel(%arg0: memref<8x48xf32, #tpu.memory_space<vmem>>, %arg1: memref<8x32xf32, #tpu.memory_space<vmem>>, %arg2: memref<48x96xf32, #tpu.memory_space<vmem>>, %arg3: memref<32x96xf32, #tpu.memory_space<vmem>>, %arg4: memref<1x96xf32, #tpu.memory_space<vmem>>, %arg5: memref<1x96xf32, #tpu.memory_space<vmem>>, %arg6: memref<48x64xf32, #tpu.memory_space<vmem>>, %arg7: memref<32x64xf32, #tpu.memory_space<vmem>>, %arg8: memref<1x64xf32, #tpu.memory_space<vmem>>, %arg9: memref<8x64xf32, #tpu.memory_space<vmem>>, %arg10: memref<8x32xf32, #tpu.memory_space<vmem>>) attributes {dimension_semantics = [], scalar_prefetch = 0 : i64, scratch_operands = 0 : i64, tpu.core_type = #tpu.core_type<tc>} {
    %c0 = arith.constant 0 : index
    %c0_0 = arith.constant 0 : index
    %0 = vector.load %arg0[%c0, %c0_0] : memref<8x48xf32, #tpu.memory_space<vmem>>, vector<8x48xf32>
    %c0_1 = arith.constant 0 : index
    %c0_2 = arith.constant 0 : index
    %1 = vector.load %arg1[%c0_1, %c0_2] : memref<8x32xf32, #tpu.memory_space<vmem>>, vector<8x32xf32>
    %c0_3 = arith.constant 0 : index
    %c0_4 = arith.constant 0 : index
    %2 = vector.load %arg2[%c0_3, %c0_4] : memref<48x96xf32, #tpu.memory_space<vmem>>, vector<48x96xf32>
    %cst = arith.constant dense<0.000000e+00> : vector<8x96xf32>
    %3 = tpu.matmul %0, %2, %cst {dimension_numbers = #tpu.dot_dimension_numbers<[1], [0], [0], [1], [0, 0, 1, 1], [], []>} : vector<8x48xf32>, vector<48x96xf32>, vector<8x96xf32> -> vector<8x96xf32>
    %c0_5 = arith.constant 0 : index
    %c0_6 = arith.constant 0 : index
    %4 = vector.load %arg4[%c0_5, %c0_6] : memref<1x96xf32, #tpu.memory_space<vmem>>, vector<1x96xf32>
    %5 = vector.broadcast %4 : vector<1x96xf32> to vector<8x96xf32>
    %6 = arith.addf %3, %5 : vector<8x96xf32>
    %c0_7 = arith.constant 0 : index
    %c0_8 = arith.constant 0 : index
    %7 = vector.load %arg3[%c0_7, %c0_8] : memref<32x96xf32, #tpu.memory_space<vmem>>, vector<32x96xf32>
    %cst_9 = arith.constant dense<0.000000e+00> : vector<8x96xf32>
    %8 = tpu.matmul %1, %7, %cst_9 {dimension_numbers = #tpu.dot_dimension_numbers<[1], [0], [0], [1], [0, 0, 1, 1], [], []>} : vector<8x32xf32>, vector<32x96xf32>, vector<8x96xf32> -> vector<8x96xf32>
    %c0_10 = arith.constant 0 : index
    %c0_11 = arith.constant 0 : index
    %9 = vector.load %arg5[%c0_10, %c0_11] : memref<1x96xf32, #tpu.memory_space<vmem>>, vector<1x96xf32>
    %10 = vector.broadcast %9 : vector<1x96xf32> to vector<8x96xf32>
    %11 = arith.addf %8, %10 : vector<8x96xf32>
    %12 = vector.extract_strided_slice %6 {offsets = [0, 0], sizes = [8, 64], strides = [1, 1]} : vector<8x96xf32> to vector<8x64xf32>
    %13 = vector.extract_strided_slice %11 {offsets = [0, 0], sizes = [8, 64], strides = [1, 1]} : vector<8x96xf32> to vector<8x64xf32>
    %14 = arith.addf %12, %13 : vector<8x64xf32>
    %15 = arith.negf %14 : vector<8x64xf32>
    %16 = math.exp %15 : vector<8x64xf32>
    %cst_12 = arith.constant 1.000000e+00 : f32
    %17 = vector.broadcast %cst_12 : f32 to vector<8x64xf32>
    %18 = arith.addf %17, %16 : vector<8x64xf32>
    %19 = arith.divf %17, %18 : vector<8x64xf32>
    %20 = vector.extract_strided_slice %19 {offsets = [0, 0], sizes = [8, 32], strides = [1, 1]} : vector<8x64xf32> to vector<8x32xf32>
    %21 = vector.extract_strided_slice %19 {offsets = [0, 32], sizes = [8, 32], strides = [1, 1]} : vector<8x64xf32> to vector<8x32xf32>
    %22 = vector.extract_strided_slice %6 {offsets = [0, 64], sizes = [8, 32], strides = [1, 1]} : vector<8x96xf32> to vector<8x32xf32>
    %23 = vector.extract_strided_slice %11 {offsets = [0, 64], sizes = [8, 32], strides = [1, 1]} : vector<8x96xf32> to vector<8x32xf32>
    %24 = arith.mulf %20, %23 : vector<8x32xf32>
    %25 = arith.addf %22, %24 : vector<8x32xf32>
    %26 = math.tanh %25 : vector<8x32xf32>
    %cst_13 = arith.constant 1.000000e+00 : f32
    %27 = vector.broadcast %cst_13 : f32 to vector<8x32xf32>
    %28 = arith.subf %27, %21 : vector<8x32xf32>
    %29 = arith.mulf %28, %26 : vector<8x32xf32>
    %30 = arith.mulf %21, %1 : vector<8x32xf32>
    %31 = arith.addf %29, %30 : vector<8x32xf32>
    %c0_14 = arith.constant 0 : index
    %c0_15 = arith.constant 0 : index
    %32 = vector.load %arg10[%c0_14, %c0_15] : memref<8x32xf32, #tpu.memory_space<vmem>>, vector<8x32xf32>
    tpu.vector_store %arg10[%c0_14, %c0_15], %31 {strides = array<i32>} : memref<8x32xf32, #tpu.memory_space<vmem>>, vector<8x32xf32>,
    %c0_16 = arith.constant 0 : index
    %c0_17 = arith.constant 0 : index
    %33 = vector.load %arg6[%c0_16, %c0_17] : memref<48x64xf32, #tpu.memory_space<vmem>>, vector<48x64xf32>
    %cst_18 = arith.constant dense<0.000000e+00> : vector<8x64xf32>
    %34 = tpu.matmul %0, %33, %cst_18 {dimension_numbers = #tpu.dot_dimension_numbers<[1], [0], [0], [1], [0, 0, 1, 1], [], []>} : vector<8x48xf32>, vector<48x64xf32>, vector<8x64xf32> -> vector<8x64xf32>
    %c0_19 = arith.constant 0 : index
    %c0_20 = arith.constant 0 : index
    %35 = vector.load %arg7[%c0_19, %c0_20] : memref<32x64xf32, #tpu.memory_space<vmem>>, vector<32x64xf32>
    %cst_21 = arith.constant dense<0.000000e+00> : vector<8x64xf32>
    %36 = tpu.matmul %31, %35, %cst_21 {dimension_numbers = #tpu.dot_dimension_numbers<[1], [0], [0], [1], [0, 0, 1, 1], [], []>} : vector<8x32xf32>, vector<32x64xf32>, vector<8x64xf32> -> vector<8x64xf32>
    %37 = arith.addf %34, %36 : vector<8x64xf32>
    %c0_22 = arith.constant 0 : index
    %c0_23 = arith.constant 0 : index
    %38 = vector.load %arg8[%c0_22, %c0_23] : memref<1x64xf32, #tpu.memory_space<vmem>>, vector<1x64xf32>
    %39 = vector.broadcast %38 : vector<1x64xf32> to vector<8x64xf32>
    %40 = arith.addf %37, %39 : vector<8x64xf32>
    %c0_24 = arith.constant 0 : index
    %c0_25 = arith.constant 0 : index
    %41 = vector.load %arg9[%c0_24, %c0_25] : memref<8x64xf32, #tpu.memory_space<vmem>>, vector<8x64xf32>
    tpu.vector_store %arg9[%c0_24, %c0_25], %40 {strides = array<i32>} : memref<8x64xf32, #tpu.memory_space<vmem>>, vector<8x64xf32>,
    return
  }
}

</mosaic_0001>

<bundles_post_ra>
// kernel: decoder_forward.1
= control target key start
LH: loop header
LB: loop body
LE: loop exit
PB: predicated region body
PF: predicated region fallthrough
CT: control target
= control target key end

     0   :  { %16 = vsyncpa [#allocation3], 0  ;;  %vm80_vm0 = vcmask 261120   ;;  %s465_s0 = inlined_call_operand.vmem [shape: f32[8,48], index: 0, kind: input, shape index: {}]   ;;  %s466_s1 = inlined_call_operand.vmem [shape: f32[8,32], index: 1, kind: input, shape index: {}]   ;;  %s467_s2 = inlined_call_operand.vmem [shape: f32[48,96], index: 2, kind: input, shape index: {}]   ;;  %s468_s3 = inlined_call_operand.vmem [shape: f32[32,96], index: 3, kind: input, shape index: {}]   ;;  %s469_s4 = inlined_call_operand.vmem [shape: f32[1,96], index: 4, kind: input, shape index: {}]   ;;  %s470_s5 = inlined_call_operand.vmem [shape: f32[1,96], index: 5, kind: input, shape index: {}]   ;;  %s471_s6 = inlined_call_operand.vmem [shape: f32[48,64], index: 6, kind: input, shape index: {}]   ;;  %s472_s7 = inlined_call_operand.vmem [shape: f32[32,64], index: 7, kind: input, shape index: {}]   ;;  %s473_s8 = inlined_call_operand.vmem [shape: f32[1,64], index: 8, kind: input, shape index: {}]   ;;  %s474_s9 = inlined_call_operand.hbm [shape: f32[8,64], index: 9, kind: output, shape index: {0}]   ;;  %s475_s10 = inlined_call_operand.hbm [shape: f32[8,32], index: 10, kind: output, shape index: {1}]  }
   0x1   :  { %v43_v0 = vld [vmem:[%s467_s2 + $0x28] sm:$0xff]  ;;  %v75_v1 = vld [vmem:[%s468_s3 + $0x18] sm:$0xff]  ;;  %v42_v2 = vld [vmem:[%s467_s2 + $0x20] sm:$0xff] }
   0x2   :  { %62 = vmatpush.msra.mxu0 %v43_v0  ;;  %96 = vmatpush.msra.mxu1 %v75_v1  ;;  %v74_v3 = vld [vmem:[%s468_s3 + $0x10] sm:$0xff]  ;;  %v41_v4 = vld [vmem:[%s467_s2 + $0x18] sm:$0xff]  ;;  %v73_v5 = vld [vmem:[%s468_s3 + $0x8] sm:$0xff] }
   0x3   :  { %v40_v6 = vld [vmem:[%s467_s2 + $0x10] sm:$0xff]  ;;  %v72_v7 = vld [vmem:[%s468_s3] sm:$0xff] }
   0x4   :  { %63 = vmatpush.msra.mxu0 %v42_v2  ;;  %97 = vmatpush.msra.mxu1 %v74_v3  ;;  %v37_v8 = vld [vmem:[%s466_s1] sm:$0xff] }
   0x6   :  { %64 = vmatpush.msra.mxu0 %v41_v4  ;;  %98 = vmatpush.msra.mxu1 %v73_v5 }
   0x7   :  { %17 = vsyncpa [#allocation5], 0  ;;  %v39_v9 = vld [vmem:[%s467_s2 + $0x8] sm:$0xff]  ;;  %v38_v10 = vld [vmem:[%s467_s2] sm:$0xff]  ;;  %vm48_vm1 = vcmask 392192   ;;  %s313_s17 = smov 64  }
   0x8   :  { %65 = vmatpush.msra.mxu0 %v40_v6  ;;  %99 = vmatpush.msra.mxu1 %v72_v7  ;;  %v410_v11 = vld [vmem:[%s465_s0] sm:$0xff]  ;;  %s314_s0 = smov 96   ;;  %v156_v37 = vld [vmem:[%s471_s6 + $0x28] sm:$0xff]  ;;  %v160_v39 = vld [vmem:[%s472_s7 + $0x18] sm:$0xff]  ;;  %s228_s2 = sshll.u32 %s475_s10, 4  ;;  %vm208_vm6 = vcmask 523264   ;;  %s229_s2 = int_to_ptr.hbm [resolvable:$true] %s228_s2 }
   0x9   :  { %243 = vmatmul.msk.f32.vlgmr.msra.gmra.mxu1 %vm80_vm0, %v37_v8  ;;  %v252_v12 = vld [vmem:[%s470_s5] ss:$0 sm:$0xff]  ;;  %193 = vmatpush.msra.mxu3 %v156_v37  ;;  %v159_v40 = vld [vmem:[%s472_s7 + $0x10] sm:$0xff]  ;;  %v154_v41 = vld [vmem:[%s471_s6 + $0x18] sm:$0xff]  ;;  %s217_s21 = sshll.u32 %s474_s9, 4  ;;  %s218_s21 = int_to_ptr.hbm [resolvable:$true] %s217_s21 }
   0xa   :  { %66 = vmatpush.msra.mxu0 %v39_v9  ;;  %v253_v15 = vld [vmem:[%s469_s4] ss:$0 sm:$0xff]  ;;  %s315_s4 = smov 32   ;;  %175 = vmatpush.msra.mxu2 %v160_v39  ;;  %v158_v42 = vld [vmem:[%s472_s7 + $0x8] sm:$0xff]  ;;  %v153_v43 = vld [vmem:[%s471_s6 + $0x10] sm:$0xff] }
   0xb   :  { %v155_v38 = vld [vmem:[%s471_s6 + $0x20] sm:$0xff]  ;;  %v152_v45 = vld [vmem:[%s471_s6 + $0x8] sm:$0xff] }
   0xc   :  { %67 = vmatpush.msra.mxu0 %v38_v10  ;;  %194 = vmatpush.msra.mxu3 %v155_v38  ;;  %v157_v44 = vld [vmem:[%s472_s7] sm:$0xff]  ;;  %s316_s7 = smov [#allocation4]  }
   0xd   :  { %242 = vmatmul.msk.f32.vlgmr.msra.gmra.mxu0 %vm48_vm1, %v410_v11  ;;  %176 = vmatpush.msra.mxu2 %v159_v40  ;;  %v151_v46 = vld [vmem:[%s471_s6] sm:$0xff]  ;;  %s226_s6 = sshll.u32 %s316_s7, 4  ;;  %s227_s6 = int_to_ptr.vmem [resolvable:$true] %s226_s6 }
   0xe   :  { %195 = vmatpush.msra.mxu3 %v154_v41  ;;  %v254_v55 = vld [vmem:[%s473_s8] ss:$0 sm:$0xff] }
   0xf   :  { %177 = vmatpush.msra.mxu2 %v158_v42 }
  0x10   :  { %196 = vmatpush.msra.mxu3 %v153_v43 }
  0x11   :  { %178 = vmatpush.msra.mxu2 %v157_v44 }
  0x12   :  { %197 = vmatpush.msra.mxu3 %v152_v45 }
  0x14   :  { %198 = vmatpush.msra.mxu3 %v151_v46 }
  0x15   :  { %246 = vmatmul.msk.f32.vlgmr.msra.gmra.mxu3 %vm48_vm1, %v410_v11 }
  0x86   :  { %v101_v13 = vpop.f32.mrf.mxu1 }
  0x87   :  { %v102_v14 = vadd.f32 %v252_v12, %v101_v13 }
  0x89   :  { %125 = vrot.lane.b32.xlu0 %v102_v14, %s313_s17 }
  0x8a   :  { %v69_v16 = vpop.f32.mrf.mxu0 }
  0x8b   :  { %v70_v17 = vadd.f32 %v253_v15, %v69_v16 }
  0x8d   :  { %v104_v18 = vadd.f32 %v102_v14, %v70_v17 }
  0x8f   :  { %v244_v19 = vmul.f32 -1.442695, %v104_v18 }
  0x91   :  { %255 = vpow2.f32 %v244_v19 }
  0x97   :  { %v256_v20 = vpop.eup %255 }
  0x98   :  { %v108_v21 = vadd.f32 1.0, %v256_v20  ;;  %v200_v54 = vpop.f32.mrf.mxu3 }
  0x9a   :  { %257 = vrcp.f32 %v108_v21  ;;  %v120_v27 = vand.u32 2147483648, %v108_v21  ;;  %vm114_vm3 = vweird.f32 %v108_v21  ;;  %v118_v28 = vand.u32 2147483647, %v108_v21 }
  0x9c   :  { %v121_v30 = vor.u32 1.1754944e-38, %v120_v27  ;;  %vm119_vm5 = vcmp.eq.f32.partialorder %v118_v28, 8.507059e+37 }
  0xa0   :  { %v258_v22 = vpop.eup %257 }
  0xa1   :  { %v110_v23 = vmul.f32 %v258_v22, %v108_v21  ;;  %vm115_vm2 = vweird.f32 %v258_v22 }
  0xa2   :  { %vm116_vm4 = vmor %vm114_vm3, %vm115_vm2 }
  0xa3   :  { %v111_v24 = vsub.f32 1.0, %v110_v23 }
  0xa5   :  { %v112_v25 = vmul.f32 %v258_v22, %v111_v24 }
  0xa7   :  { %v113_v26 = vadd.f32 %v258_v22, %v112_v25 }
  0xa9   :  { %v117_v29 = vsel %vm116_vm4, %v258_v22, %v113_v26 }
  0xaa   :  { %v122_v32 = vsel %vm119_vm5, %v121_v30, %v117_v29 }
  0xab   :  { %v135_v48 = vsub.f32 1.0, %v122_v32 }
  0xfb   :  { %v126_v31 = vpop.permute.xlu0 %125 }
  0xfc   :  { %v128_v33 = vmul.f32 %v126_v31, %v122_v32 }
  0xfe   :  { %130 = vrot.lane.b32.xlu0 %v128_v33, %s313_s17 }
 0x170   :  { %v131_v34 = vpop.permute.xlu0 %130 }
 0x171   :  { %v133_v35 = vadd.f32 %v131_v34, %v70_v17 }
 0x173   :  { %259 = vtanh.f32 %v133_v35 }
 0x179   :  { %v260_v36 = vpop.eup %259 }
 0x17a   :  { %137 = vrot.lane.b32.xlu1 %v260_v36, %s314_s0 }
 0x182   :  { %141 = vrot.lane.b32.xlu1 %v37_v8, %s315_s4 }
 0x1ec   :  { %v138_v47 = vpop.permute.xlu1 %137 }
 0x1ed   :  { %v140_v50 = vmul.f32 %v138_v47, %v135_v48 }
 0x1f4   :  { %v142_v49 = vpop.permute.xlu1 %141 }
 0x1f5   :  { %v144_v51 = vmul.f32 %v142_v49, %v122_v32 }
 0x1f7   :  { %v145_v52 = vadd.f32 %v144_v51, %v140_v50 }
 0x1f9   :  { %147 = vrot.lane.b32.xlu2 %v145_v52, %s314_s0  ;;  %s317_s0 = smov [#allocation2]  }
 0x1fa   :  { %s215_s5 = sshll.u32 %s317_s0, 4  ;;  %s216_s5 = int_to_ptr.vmem [resolvable:$true] %s215_s5 }
 0x253   :  { %v148_v53 = vpop.permute.xlu2 %147 }
 0x254   :  { %150 = vst.msk [vmem:[#allocation4] sm:$0xff] %vm80_vm0, %v148_v53  ;;  %245 = vmatmul.msk.f32.vlgmr.msra.gmra.mxu2 %vm80_vm0, %v148_v53 }
 0x255   :  { %231 = dma.vmem_to_hbm [thread:$0]  %s227_s6, 128, %s229_s2, [#allocation5]  }
 0x2d7   :  { %v180_v56 = vpop.f32.mrf.mxu2 }
 0x2d8   :  { %v201_v57 = vadd.f32 %v200_v54, %v180_v56 }
 0x2da   :  { %v207_v58 = vadd.f32 %v254_v55, %v201_v57 }
 0x2dc   :  { %209 = vst.msk [vmem:[#allocation2] sm:$0xff] %vm208_vm6, %v207_v58 }
 0x2dd   :  { %220 = dma.vmem_to_hbm [thread:$0]  %s216_s5, 128, %s218_s21, [#allocation3]  }
 0x2de   :  { %309 = dma.done.wait [#allocation3], 128  }
 0x2df   :  { %310 = vsyncadd [#allocation3], 4294967168 }
 0x2e0   :  { %311 = dma.done.wait [#allocation5], 128  }
 0x2e1   :  { %312 = vsyncadd [#allocation5], 4294967168 }
 0x2e2   :  { %240 = vsyncpa [#allocation3], 1 }
 0x2e3   :  { %241 = vsyncpa [#allocation5], 1 }

</bundles_post_ra>
